<compile_context>
chip_gen: v5e
topology: v5e:2x2
jax: 0.10.0
libtpu: 0.0.40
codegen_flags: <defaults>
</compile_context>

<pallas_src>
from functools import partial

import jax
import jax.numpy as jnp
from jax import lax
from jax.experimental import pallas as pl
from jax.experimental.pallas import tpu as pltpu


def attention_kernel(x_ref, wqkv_ref, wp_ref, bp_ref, o_ref, heads_ref, *,
                     num_heads, scale):
    """One batch element: fused QKV, per-head attention, single output proj."""
    N, C = x_ref.shape
    hd = C // num_heads

    x = x_ref[...]                                                    # (N, C)

    # Single lane-dense QKV projection: (N, C) @ (C, 3C) -> (N, 3C).
    qkv = jnp.dot(x, wqkv_ref[...], preferred_element_type=jnp.float32)

    # Column layout of qkv follows torch's reshape(B, N, 3, H, hd):
    #   q of head h -> cols [h*hd, (h+1)*hd), k -> C + same, v -> 2C + same.
    for h in range(num_heads):
        q = qkv[:, h * hd:(h + 1) * hd] * scale          # scale folded into q
        k = qkv[:, C + h * hd:C + (h + 1) * hd]
        v = qkv[:, 2 * C + h * hd:2 * C + (h + 1) * hd]

        # q @ k^T without materializing a transpose: contract last dims on MXU.
        s = lax.dot_general(q, k, dimension_numbers=(((1,), (1,)), ((), ())),
                            preferred_element_type=jnp.float32)       # (N, N)

        # Numerically stable softmax with deferred normalization.
        s = s - jnp.max(s, axis=-1, keepdims=True)
        p = jnp.exp(s)
        denom = jnp.sum(p, axis=-1, keepdims=True)                    # (N, 1)
        out_h = jnp.dot(p, v, preferred_element_type=jnp.float32)     # (N, hd)
        out_h = out_h * pl.reciprocal(denom, approx=True)             # EUP
        # attn_drop: ratio 0.0 -> identity

        heads_ref[:, h * hd:(h + 1) * hd] = out_h

    # One full-K output projection + bias: (N, C) @ (C, C) + (1, C).
    y = jnp.dot(heads_ref[...], wp_ref[...], preferred_element_type=jnp.float32)
    o_ref[...] = (y + bp_ref[...]).astype(o_ref.dtype)
    # proj_drop: ratio 0.0 -> identity


def vit_attention(x, w_qkv, w_proj, b_proj, num_heads):
    """x: (B, N, C); w_qkv: (3C, C) torch Linear weight; w_proj: (C, C); b_proj: (C,)."""
    B, N, C = x.shape
    hd = C // num_heads
    scale = hd ** -0.5

    # Torch Linear computes x @ W^T.
    wqkv_t = w_qkv.T                  # (C, 3C), columns ordered [q | k | v]
    wp_t = w_proj.T                   # (C, C)
    bp = b_proj.reshape(1, C)         # (1, C)

    kernel = partial(attention_kernel, num_heads=num_heads, scale=scale)

    return pl.pallas_call(
        kernel,
        out_shape=jax.ShapeDtypeStruct((B, N, C), x.dtype),
        grid_spec=pltpu.PrefetchScalarGridSpec(
            num_scalar_prefetch=0,
            grid=(B,),
            in_specs=[
                pl.BlockSpec((None, N, C), lambda b: (b, 0, 0)),    # x (batch squeezed)
                pl.BlockSpec((C, 3 * C), lambda b: (0, 0)),         # fused W_qkv^T
                pl.BlockSpec((C, C), lambda b: (0, 0)),             # W_proj^T
                pl.BlockSpec((1, C), lambda b: (0, 0)),             # proj bias
            ],
            out_specs=pl.BlockSpec((None, N, C), lambda b: (b, 0, 0)),
            scratch_shapes=[pltpu.VMEM((N, C), jnp.float32)],       # concat'd head outputs
        ),
        compiler_params=pltpu.CompilerParams(
            dimension_semantics=("parallel",)),
    )(x, wqkv_t, wp_t, bp)


def attention_ref(x, w_qkv, w_proj, b_proj, num_heads):
    """Plain-JAX reference mirroring the PyTorch forward."""
    B, N, C = x.shape
    H = num_heads
    hd = C // H
    scale = hd ** -0.5
    qkv = (x @ w_qkv.T).reshape(B, N, 3, H, hd).transpose(2, 0, 3, 1, 4)
    q, k, v = qkv[0], qkv[1], qkv[2]
    attn = jnp.einsum('bhqd,bhkd->bhqk', q, k) * scale
    attn = jax.nn.softmax(attn, axis=-1)
    out = jnp.einsum('bhqk,bhkd->bhqd', attn, v)
    out = out.transpose(0, 2, 1, 3).reshape(B, N, C)
    return out @ w_proj.T + b_proj


if __name__ == "__main__":
    B, N, C, H = 2, 8, 32, 4   # head_dim = 8

    key = jax.random.PRNGKey(0)
    kx, kqkv, kp, kb = jax.random.split(key, 4)

    x = jax.random.normal(kx, (B, N, C), dtype=jnp.float32)
    # Deterministic synthetic parameters (nn.Linear(dim, 3*dim, bias=False) / nn.Linear(dim, dim)).
    w_qkv = 0.05 * jax.random.normal(kqkv, (3 * C, C), dtype=jnp.float32)
    w_proj = 0.05 * jax.random.normal(kp, (C, C), dtype=jnp.float32)
    b_proj = 0.05 * jax.random.normal(kb, (C,), dtype=jnp.float32)

    out = vit_attention(x, w_qkv, w_proj, b_proj, H)
    out = jax.block_until_ready(out)

    ref = attention_ref(x, w_qkv, w_proj, b_proj, H)
    assert out.shape == (B, N, C)
    # Tolerance slightly looser than 1e-5 because the softmax denominator uses
    # the EUP approximate reciprocal (pl.reciprocal(..., approx=True)).
    assert jnp.allclose(out, ref, atol=1e-3, rtol=1e-3), (
        f"max abs err = {jnp.max(jnp.abs(out - ref))}")

    print("KERNEL_OK")
</pallas_src>

<mosaic_0001>
module attributes {stable_mosaic.version = 11 : i64} {
  func.func @attention_kernel(%arg0: i32, %arg1: memref<1x8x32xf32, #tpu.memory_space<vmem>>, %arg2: memref<32x96xf32, #tpu.memory_space<vmem>>, %arg3: memref<32x32xf32, #tpu.memory_space<vmem>>, %arg4: memref<1x32xf32, #tpu.memory_space<vmem>>, %arg5: memref<1x8x32xf32, #tpu.memory_space<vmem>>, %arg6: memref<8x32xf32, #tpu.memory_space<vmem>>) attributes {dimension_semantics = [#tpu.dimension_semantics<parallel>], iteration_bounds = array<i64: 2>, scalar_prefetch = 0 : i64, scratch_operands = 1 : i64, tpu.core_type = #tpu.core_type<tc>, window_params = [{transform_indices = @transform_0, window_bounds = array<i64: 1, 8, 32>}, {pipeline_mode = #tpu.pipeline_mode<synchronous>, transform_indices = @transform_1, window_bounds = array<i64: 32, 96>}, {pipeline_mode = #tpu.pipeline_mode<synchronous>, transform_indices = @transform_2, window_bounds = array<i64: 32, 32>}, {pipeline_mode = #tpu.pipeline_mode<synchronous>, transform_indices = @transform_3, window_bounds = array<i64: 1, 32>}, {transform_indices = @transform_4, window_bounds = array<i64: 1, 8, 32>}]} {
    %c0 = arith.constant 0 : index
    %c0_0 = arith.constant 0 : index
    %c0_1 = arith.constant 0 : index
    %0 = vector.load %arg1[%c0, %c0_0, %c0_1] : memref<1x8x32xf32, #tpu.memory_space<vmem>>, vector<1x8x32xf32>
    %1 = vector.shape_cast %0 : vector<1x8x32xf32> to vector<8x32xf32>
    %c0_2 = arith.constant 0 : index
    %c0_3 = arith.constant 0 : index
    %2 = vector.load %arg2[%c0_2, %c0_3] : memref<32x96xf32, #tpu.memory_space<vmem>>, vector<32x96xf32>
    %cst = arith.constant dense<0.000000e+00> : vector<8x96xf32>
    %3 = tpu.matmul %1, %2, %cst {dimension_numbers = #tpu.dot_dimension_numbers<[1], [0], [0], [1], [0, 0, 1, 1], [], []>} : vector<8x32xf32>, vector<32x96xf32>, vector<8x96xf32> -> vector<8x96xf32>
    %4 = vector.extract_strided_slice %3 {offsets = [0, 0], sizes = [8, 8], strides = [1, 1]} : vector<8x96xf32> to vector<8x8xf32>
    %cst_4 = arith.constant 0.353553385 : f32
    %5 = vector.broadcast %cst_4 : f32 to vector<8x8xf32>
    %6 = arith.mulf %4, %5 : vector<8x8xf32>
    %7 = vector.extract_strided_slice %3 {offsets = [0, 32], sizes = [8, 8], strides = [1, 1]} : vector<8x96xf32> to vector<8x8xf32>
    %8 = vector.extract_strided_slice %3 {offsets = [0, 64], sizes = [8, 8], strides = [1, 1]} : vector<8x96xf32> to vector<8x8xf32>
    %cst_5 = arith.constant dense<0.000000e+00> : vector<8x8xf32>
    %9 = tpu.matmul %6, %7, %cst_5 {dimension_numbers = #tpu.dot_dimension_numbers<[1], [1], [0], [0], [0, 0, 1, 0], [], []>} : vector<8x8xf32>, vector<8x8xf32>, vector<8x8xf32> -> vector<8x8xf32>
    %cst_6 = arith.constant dense<0xFF800000> : vector<8xf32>
    %10 = vector.multi_reduction <maximumf>, %9, %cst_6 [1] : vector<8x8xf32> to vector<8xf32>
    %11 = vector.shape_cast %10 : vector<8xf32> to vector<8x1xf32>
    %12 = vector.broadcast %11 : vector<8x1xf32> to vector<8x8xf32>
    %13 = arith.subf %9, %12 : vector<8x8xf32>
    %14 = math.exp %13 : vector<8x8xf32>
    %cst_7 = arith.constant dense<0.000000e+00> : vector<8xf32>
    %15 = vector.multi_reduction <add>, %14, %cst_7 [1] : vector<8x8xf32> to vector<8xf32>
    %16 = vector.shape_cast %15 : vector<8xf32> to vector<8x1xf32>
    %cst_8 = arith.constant dense<0.000000e+00> : vector<8x8xf32>
    %17 = tpu.matmul %14, %8, %cst_8 {dimension_numbers = #tpu.dot_dimension_numbers<[1], [0], [0], [1], [0, 0, 1, 1], [], []>} : vector<8x8xf32>, vector<8x8xf32>, vector<8x8xf32> -> vector<8x8xf32>
    %18 = tpu.reciprocal %16 {approx = true} : vector<8x1xf32> -> vector<8x1xf32>
    %19 = vector.broadcast %18 : vector<8x1xf32> to vector<8x8xf32>
    %20 = arith.mulf %17, %19 : vector<8x8xf32>
    %c0_9 = arith.constant 0 : index
    %c0_10 = arith.constant 0 : index
    %21 = vector.load %arg6[%c0_9, %c0_10] : memref<8x32xf32, #tpu.memory_space<vmem>>, vector<8x8xf32>
    tpu.vector_store %arg6[%c0_9, %c0_10], %20 {strides = array<i32>} : memref<8x32xf32, #tpu.memory_space<vmem>>, vector<8x8xf32>,
    %22 = vector.extract_strided_slice %3 {offsets = [0, 8], sizes = [8, 8], strides = [1, 1]} : vector<8x96xf32> to vector<8x8xf32>
    %cst_11 = arith.constant 0.353553385 : f32
    %23 = vector.broadcast %cst_11 : f32 to vector<8x8xf32>
    %24 = arith.mulf %22, %23 : vector<8x8xf32>
    %25 = vector.extract_strided_slice %3 {offsets = [0, 40], sizes = [8, 8], strides = [1, 1]} : vector<8x96xf32> to vector<8x8xf32>
    %26 = vector.extract_strided_slice %3 {offsets = [0, 72], sizes = [8, 8], strides = [1, 1]} : vector<8x96xf32> to vector<8x8xf32>
    %cst_12 = arith.constant dense<0.000000e+00> : vector<8x8xf32>
    %27 = tpu.matmul %24, %25, %cst_12 {dimension_numbers = #tpu.dot_dimension_numbers<[1], [1], [0], [0], [0, 0, 1, 0], [], []>} : vector<8x8xf32>, vector<8x8xf32>, vector<8x8xf32> -> vector<8x8xf32>
    %cst_13 = arith.constant dense<0xFF800000> : vector<8xf32>
    %28 = vector.multi_reduction <maximumf>, %27, %cst_13 [1] : vector<8x8xf32> to vector<8xf32>
    %29 = vector.shape_cast %28 : vector<8xf32> to vector<8x1xf32>
    %30 = vector.broadcast %29 : vector<8x1xf32> to vector<8x8xf32>
    %31 = arith.subf %27, %30 : vector<8x8xf32>
    %32 = math.exp %31 : vector<8x8xf32>
    %cst_14 = arith.constant dense<0.000000e+00> : vector<8xf32>
    %33 = vector.multi_reduction <add>, %32, %cst_14 [1] : vector<8x8xf32> to vector<8xf32>
    %34 = vector.shape_cast %33 : vector<8xf32> to vector<8x1xf32>
    %cst_15 = arith.constant dense<0.000000e+00> : vector<8x8xf32>
    %35 = tpu.matmul %32, %26, %cst_15 {dimension_numbers = #tpu.dot_dimension_numbers<[1], [0], [0], [1], [0, 0, 1, 1], [], []>} : vector<8x8xf32>, vector<8x8xf32>, vector<8x8xf32> -> vector<8x8xf32>
    %36 = tpu.reciprocal %34 {approx = true} : vector<8x1xf32> -> vector<8x1xf32>
    %37 = vector.broadcast %36 : vector<8x1xf32> to vector<8x8xf32>
    %38 = arith.mulf %35, %37 : vector<8x8xf32>
    %c0_16 = arith.constant 0 : index
    %c8 = arith.constant 8 : index
    %39 = vector.load %arg6[%c0_16, %c8] : memref<8x32xf32, #tpu.memory_space<vmem>>, vector<8x8xf32>
    tpu.vector_store %arg6[%c0_16, %c8], %38 {strides = array<i32>} : memref<8x32xf32, #tpu.memory_space<vmem>>, vector<8x8xf32>,
    %40 = vector.extract_strided_slice %3 {offsets = [0, 16], sizes = [8, 8], strides = [1, 1]} : vector<8x96xf32> to vector<8x8xf32>
    %cst_17 = arith.constant 0.353553385 : f32
    %41 = vector.broadcast %cst_17 : f32 to vector<8x8xf32>
    %42 = arith.mulf %40, %41 : vector<8x8xf32>
    %43 = vector.extract_strided_slice %3 {offsets = [0, 48], sizes = [8, 8], strides = [1, 1]} : vector<8x96xf32> to vector<8x8xf32>
    %44 = vector.extract_strided_slice %3 {offsets = [0, 80], sizes = [8, 8], strides = [1, 1]} : vector<8x96xf32> to vector<8x8xf32>
    %cst_18 = arith.constant dense<0.000000e+00> : vector<8x8xf32>
    %45 = tpu.matmul %42, %43, %cst_18 {dimension_numbers = #tpu.dot_dimension_numbers<[1], [1], [0], [0], [0, 0, 1, 0], [], []>} : vector<8x8xf32>, vector<8x8xf32>, vector<8x8xf32> -> vector<8x8xf32>
    %cst_19 = arith.constant dense<0xFF800000> : vector<8xf32>
    %46 = vector.multi_reduction <maximumf>, %45, %cst_19 [1] : vector<8x8xf32> to vector<8xf32>
    %47 = vector.shape_cast %46 : vector<8xf32> to vector<8x1xf32>
    %48 = vector.broadcast %47 : vector<8x1xf32> to vector<8x8xf32>
    %49 = arith.subf %45, %48 : vector<8x8xf32>
    %50 = math.exp %49 : vector<8x8xf32>
    %cst_20 = arith.constant dense<0.000000e+00> : vector<8xf32>
    %51 = vector.multi_reduction <add>, %50, %cst_20 [1] : vector<8x8xf32> to vector<8xf32>
    %52 = vector.shape_cast %51 : vector<8xf32> to vector<8x1xf32>
    %cst_21 = arith.constant dense<0.000000e+00> : vector<8x8xf32>
    %53 = tpu.matmul %50, %44, %cst_21 {dimension_numbers = #tpu.dot_dimension_numbers<[1], [0], [0], [1], [0, 0, 1, 1], [], []>} : vector<8x8xf32>, vector<8x8xf32>, vector<8x8xf32> -> vector<8x8xf32>
    %54 = tpu.reciprocal %52 {approx = true} : vector<8x1xf32> -> vector<8x1xf32>
    %55 = vector.broadcast %54 : vector<8x1xf32> to vector<8x8xf32>
    %56 = arith.mulf %53, %55 : vector<8x8xf32>
    %c0_22 = arith.constant 0 : index
    %c16 = arith.constant 16 : index
    %57 = vector.load %arg6[%c0_22, %c16] : memref<8x32xf32, #tpu.memory_space<vmem>>, vector<8x8xf32>
    tpu.vector_store %arg6[%c0_22, %c16], %56 {strides = array<i32>} : memref<8x32xf32, #tpu.memory_space<vmem>>, vector<8x8xf32>,
    %58 = vector.extract_strided_slice %3 {offsets = [0, 24], sizes = [8, 8], strides = [1, 1]} : vector<8x96xf32> to vector<8x8xf32>
    %cst_23 = arith.constant 0.353553385 : f32
    %59 = vector.broadcast %cst_23 : f32 to vector<8x8xf32>
    %60 = arith.mulf %58, %59 : vector<8x8xf32>
    %61 = vector.extract_strided_slice %3 {offsets = [0, 56], sizes = [8, 8], strides = [1, 1]} : vector<8x96xf32> to vector<8x8xf32>
    %62 = vector.extract_strided_slice %3 {offsets = [0, 88], sizes = [8, 8], strides = [1, 1]} : vector<8x96xf32> to vector<8x8xf32>
    %cst_24 = arith.constant dense<0.000000e+00> : vector<8x8xf32>
    %63 = tpu.matmul %60, %61, %cst_24 {dimension_numbers = #tpu.dot_dimension_numbers<[1], [1], [0], [0], [0, 0, 1, 0], [], []>} : vector<8x8xf32>, vector<8x8xf32>, vector<8x8xf32> -> vector<8x8xf32>
    %cst_25 = arith.constant dense<0xFF800000> : vector<8xf32>
    %64 = vector.multi_reduction <maximumf>, %63, %cst_25 [1] : vector<8x8xf32> to vector<8xf32>
    %65 = vector.shape_cast %64 : vector<8xf32> to vector<8x1xf32>
    %66 = vector.broadcast %65 : vector<8x1xf32> to vector<8x8xf32>
    %67 = arith.subf %63, %66 : vector<8x8xf32>
    %68 = math.exp %67 : vector<8x8xf32>
    %cst_26 = arith.constant dense<0.000000e+00> : vector<8xf32>
    %69 = vector.multi_reduction <add>, %68, %cst_26 [1] : vector<8x8xf32> to vector<8xf32>
    %70 = vector.shape_cast %69 : vector<8xf32> to vector<8x1xf32>
    %cst_27 = arith.constant dense<0.000000e+00> : vector<8x8xf32>
    %71 = tpu.matmul %68, %62, %cst_27 {dimension_numbers = #tpu.dot_dimension_numbers<[1], [0], [0], [1], [0, 0, 1, 1], [], []>} : vector<8x8xf32>, vector<8x8xf32>, vector<8x8xf32> -> vector<8x8xf32>
    %72 = tpu.reciprocal %70 {approx = true} : vector<8x1xf32> -> vector<8x1xf32>
    %73 = vector.broadcast %72 : vector<8x1xf32> to vector<8x8xf32>
    %74 = arith.mulf %71, %73 : vector<8x8xf32>
    %c0_28 = arith.constant 0 : index
    %c24 = arith.constant 24 : index
    %75 = vector.load %arg6[%c0_28, %c24] : memref<8x32xf32, #tpu.memory_space<vmem>>, vector<8x8xf32>
    tpu.vector_store %arg6[%c0_28, %c24], %74 {strides = array<i32>} : memref<8x32xf32, #tpu.memory_space<vmem>>, vector<8x8xf32>,
    %c0_29 = arith.constant 0 : index
    %c0_30 = arith.constant 0 : index
    %76 = vector.load %arg6[%c0_29, %c0_30] : memref<8x32xf32, #tpu.memory_space<vmem>>, vector<8x32xf32>
    %c0_31 = arith.constant 0 : index
    %c0_32 = arith.constant 0 : index
    %77 = vector.load %arg3[%c0_31, %c0_32] : memref<32x32xf32, #tpu.memory_space<vmem>>, vector<32x32xf32>
    %cst_33 = arith.constant dense<0.000000e+00> : vector<8x32xf32>
    %78 = tpu.matmul %76, %77, %cst_33 {dimension_numbers = #tpu.dot_dimension_numbers<[1], [0], [0], [1], [0, 0, 1, 1], [], []>} : vector<8x32xf32>, vector<32x32xf32>, vector<8x32xf32> -> vector<8x32xf32>
    %c0_34 = arith.constant 0 : index
    %c0_35 = arith.constant 0 : index
    %79 = vector.load %arg4[%c0_34, %c0_35] : memref<1x32xf32, #tpu.memory_space<vmem>>, vector<1x32xf32>
    %80 = vector.broadcast %79 : vector<1x32xf32> to vector<8x32xf32>
    %81 = arith.addf %78, %80 : vector<8x32xf32>
    %c0_36 = arith.constant 0 : index
    %c0_37 = arith.constant 0 : index
    %c0_38 = arith.constant 0 : index
    %82 = vector.load %arg5[%c0_36, %c0_37, %c0_38] : memref<1x8x32xf32, #tpu.memory_space<vmem>>, vector<1x8x32xf32>
    %83 = vector.shape_cast %82 : vector<1x8x32xf32> to vector<8x32xf32>
    %84 = vector.shape_cast %81 : vector<8x32xf32> to vector<1x8x32xf32>
    tpu.vector_store %arg5[%c0_36, %c0_37, %c0_38], %84 {strides = array<i32>} : memref<1x8x32xf32, #tpu.memory_space<vmem>>, vector<1x8x32xf32>,
    return
  }
  func.func @transform_0(%arg0: i32) -> (i32, i32, i32) {
    %c0_i32 = arith.constant 0 : i32
    %c0_i32_0 = arith.constant 0 : i32
    %c0_i32_1 = arith.constant 0 : i32
    return %arg0, %c0_i32, %c0_i32_0 : i32, i32, i32
  }
  func.func @transform_1(%arg0: i32) -> (i32, i32) {
    %c0_i32 = arith.constant 0 : i32
    %c0_i32_0 = arith.constant 0 : i32
    %c0_i32_1 = arith.constant 0 : i32
    return %c0_i32, %c0_i32_0 : i32, i32
  }
  func.func @transform_2(%arg0: i32) -> (i32, i32) {
    %c0_i32 = arith.constant 0 : i32
    %c0_i32_0 = arith.constant 0 : i32
    %c0_i32_1 = arith.constant 0 : i32
    return %c0_i32, %c0_i32_0 : i32, i32
  }
  func.func @transform_3(%arg0: i32) -> (i32, i32) {
    %c0_i32 = arith.constant 0 : i32
    %c0_i32_0 = arith.constant 0 : i32
    %c0_i32_1 = arith.constant 0 : i32
    return %c0_i32, %c0_i32_0 : i32, i32
  }
  func.func @transform_4(%arg0: i32) -> (i32, i32, i32) {
    %c0_i32 = arith.constant 0 : i32
    %c0_i32_0 = arith.constant 0 : i32
    %c0_i32_1 = arith.constant 0 : i32
    return %arg0, %c0_i32, %c0_i32_0 : i32, i32, i32
  }
}

</mosaic_0001>

<bundles_post_ra>
// kernel: tpu_custom_call.1
= control target key start
LH: loop header
LB: loop body
LE: loop exit
PB: predicated region body
PF: predicated region fallthrough
CT: control target
= control target key end

     0   :  { %9 = vsyncpa [#allocation4], 0  ;;  %s1207_s0 = inlined_call_operand.hbm [shape: f32[2,8,32], index: 0, kind: input, shape index: {}]   ;;  %s1208_s1 = inlined_call_operand.hbm [shape: f32[32,96], index: 1, kind: input, shape index: {}]   ;;  %s1209_s2 = inlined_call_operand.hbm [shape: f32[32,32], index: 2, kind: input, shape index: {}]   ;;  %s1210_s3 = inlined_call_operand.vmem [shape: f32[1,32], index: 3, kind: input, shape index: {}]   ;;  %s1211_s4 = inlined_call_operand.hbm [shape: f32[2,8,32], index: 4, kind: output, shape index: {}]  }
   0x1   :  { %11 = vsyncpa [#allocation4 + $0x1], 0 }
   0x2   :  { %12 = vsyncpa [#allocation7], 0 }
   0x3   :  { %13 = vsyncpa [#allocation5], 0 }
   0x4   :  { %15 = vsyncpa [#allocation5 + $0x1], 0  ;;  %s1031_s15 = smov 0   ;;  %s1033_s16 = smov 0  }
   0x5   :  { %s1035_s17 = smov 0   ;;  %s1037_s18 = smov 0  }
   0x6 LB: > { %s152_s21 = sshll.u32 %s1208_s1, 4  ;;  %s1055_s22 = sadd.s32 4294967295, %s986_s18   ;;  %s986_s18 = sphi %s1037_s18, %s1222_s18   ;;  %s982_s17 = sphi %s1035_s17, %s1221_s17   ;;  %s978_s16 = sphi %s1033_s16, %s1220_s16   ;;  %s974_s15 = sphi %s1031_s15, %s1219_s15   ;;  %s153_s21 = int_to_ptr.hbm [resolvable:$true] %s152_s21 }
   0x7   : > { %p697_p0 = scmp.ge.s32.totalorder %s986_s18, 1  ;;  %p42_p1 = scmp.eq.s32.totalorder %s1055_s22, 0 }
   0x8   : > { %p141_p2 = scmp.lt.s32.totalorder %s986_s18, 3  ;;  %s988_s24 = smov [#allocation6]  }
   0x9   : > { %s154_s25 = sshll.u32 %s988_s24, 4  ;;  %s166_s28 = sshll.u32 %s1209_s2, 4  ;;  %s155_s25 = int_to_ptr.vmem [resolvable:$true] %s154_s25  ;;  %s167_s28 = int_to_ptr.hbm [resolvable:$true] %s166_s28 }
   0xa   : > { %p1060_p3 = pnand %p697_p0, %p141_p2  ;;  %s989_s29 = smov [#allocation8]  }
   0xb   : > { %s168_s30 = sshll.u32 %s989_s29, 4  ;;  %s990_s5 = smov 128   ;;  %s169_s30 = int_to_ptr.vmem [resolvable:$true] %s168_s30 }
   0xc   : > { %p738_p4 = pneg %p1060_p3  ;;  %s991_s6 = smov 8  }
   0xd   : > { %s696_s7 = sadd.s32 4294967294, %s986_s18   ;;  %s1074_s8 = sadd.s32 1, %s986_s18  }
   0xe   : > { %p739_p6 = pnand %p738_p4, %p42_p1  ;;  %s25_s9 = ssub.s32 %s986_s18, %s1074_s8 }
   0xf   : > { %s28_s10 = sadd.s32 1, %s982_s17  ;;  %p26_p7 = scmp.eq.s32.totalorder %s25_s9, 0 }
  0x10   : > { %741 = dma.hbm_to_vmem [thread:$0]  (!%p739_p6), %s153_s21, 512, %s155_s25, [#allocation7], %s990_s5, %s990_s5, %s991_s6  }
  0x11   : > { %744 = dma.hbm_to_vmem [thread:$0]  (!%p739_p6), %s167_s28, 512, %s169_s30, [#allocation7], %s990_s5, %s990_s5, %s991_s6  }
  0x12   : > { %p35_p8 = scmp.ne.s32.totalorder %s982_s17, %s978_s16  ;;  %p36_p9 = scmp.eq.s32.totalorder %s986_s18, 0 }
  0x13   : > { %p41_p10 = scmp.ne.s32.totalorder %s978_s16, %s974_s15  ;;  %p128_p13 = scmp.eq.s32.totalorder %s1055_s22, 1 }
  0x14   : > { %s1085_s11 = scalar_select %p26_p7, %s982_s17, %s28_s10  }
  0x15   : > { %p1087_p11 = por %p36_p9, %p35_p8  ;;  %p1093_p12 = por %p42_p1, %p41_p10 }
  0x16   : > { %p134_p0 = scmp.eq.s32.totalorder %s696_s7, 1  ;;  %p755_p2 = scmp.lt.s32.totalorder %s986_s18, 2 }
  0x17   : > { %s185_s14 = sand.u32 1, %s982_s17   ;;  %p1100_p4 = por %p128_p13, %p35_p8 }
  0x18   : > { %p1104_p6 = por %p134_p0, %p41_p10  ;;  %s701_s21 = sshll.u32 %s185_s14, 3 }
  0x19   : > { %s702_s24 = sshll.u32 %s986_s18, 3  ;;  %s189_s28 = scalar_lea.vmem [#allocation3], %s701_s21 }
  0x1a   : > { %s193_s27 = scalar_lea.hbm %s1207_s0, %s702_s24  ;;  %s197_s29 = sshll.u32 %s189_s28, 4  ;;  %s198_s29 = int_to_ptr.vmem [resolvable:$true] %s197_s29 }
  0x1b   : > { %s195_s30 = sshll.u32 %s193_s27, 4  ;;  %p1114_p7 = pnand %p755_p2, %p1087_p11  ;;  %s196_s30 = int_to_ptr.hbm [resolvable:$true] %s195_s30 }
  0x1c   : > { %s186_s6 = scalar_lea.sflag [#allocation4], %s185_s14  ;;  %s886_s7 = sshra.s32 %s196_s30, 4  ;;  %s887_s7 = int_to_ptr.hbm [resolvable:$true] %s886_s7 }
  0x1d   : > { %s888_s9 = scalar_lea.hbm %s887_s7, 8  ;;  %p890_p9 = pneg %p1114_p7 }
  0x1e   : > { %p889_p8 = scmp.ne.s32.totalorder %s887_s7, %s888_s9  ;;  %s893_s24 = scalar_lea.hbm %s1207_s0, 16 }
  0x1f   : > { %p894_p11 = scmp.lt.s32.totalorder %s887_s7, %s1207_s0  ;;  %p895_p0 = scmp.lt.s32.totalorder %s893_s24, %s888_s9 }
  0x20   : > { %p891_p10 = pnand %p890_p9, %p889_p8 }
  0x21   : > { %p896_p2 = por %p895_p0, %p894_p11 }
  0x22   : > { %p892_p13 = pneg %p891_p10 }
  0x24   : > { %p897_p5 = pnand %p896_p2, %p892_p13 }
  0x26   : > { %900 = shalt.err (!%p897_p5)
}
  0x27   : > { %748 = dma.hbm_to_vmem [thread:$0]  (!%p1114_p7), %s196_s30, 128, %s198_s29, %s186_s6  }
  0x28   : > { %206 = sbr.rel (%p1060_p3) target bundleno = 971 (0x3cb), region = 36  ;;  %s1131_s14 = sand.u32 (!%p1060_p3), 1, %s978_s16  }
  0x29   : > { %s704_s26 = sshll.u32 (!%p1060_p3), %s1131_s14, 3  ;;  %s209_s27 = scalar_lea.sflag (!%p1060_p3), [#allocation4], %s1131_s14 }
  0x2a   : > { %s212_s28 = scalar_lea.vmem (!%p1060_p3), [#allocation3], %s704_s26 }
  0x2d   : > { %961 = dma.done.wait (%p1093_p12), %s209_s27, 128  }
  0x2e   : > { %963 = vsyncadd (%p1093_p12), %s209_s27, 4294967168 }
  0x2f   : > { %965 = dma.done.wait (%p42_p1), [#allocation7], 1024  }
  0x30   : > { %967 = vsyncadd (%p42_p1), [#allocation7], 4294966272  ;;  %v252_v0 = vld [vmem:[#allocation6 + $0x18] sm:$0xff]  ;;  %v251_v1 = vld [vmem:[#allocation6 + $0x10] sm:$0xff]  ;;  %vm253_vm0 = vcmask 261120   ;;  %s992_s23 = smov 72  }
  0x31   : > { %269 = vmatpush.msra.mxu0 %v252_v0  ;;  %v250_v2 = vld [vmem:[#allocation6 + $0x8] sm:$0xff]  ;;  %v249_v3 = vld [vmem:[#allocation6] sm:$0xff]  ;;  %v248_v4 = vld [vmem:[%s212_s28] sm:$0xff]  ;;  %s993_s13 = smov 96   ;;  %s994_s29 = smov 120   ;;  %vm281_vm1 = vcmask 64512  }
  0x32   : > { %s995_s30 = smov 88   ;;  %s996_s5 = smov 112   ;;  %vm414_vm2 = vcmask 130112   ;;  %v562_v63 = vld [vmem:[#allocation8 + $0x18] sm:$0xff]  ;;  %v561_v0 = vld [vmem:[#allocation8 + $0x10] sm:$0xff]  ;;  %vm485_vm3 = vcmask 195712  }
  0x33   : > { %270 = vmatpush.msra.mxu0 %v251_v1  ;;  %s997_s6 = smov 80   ;;  %s998_s7 = smov 104   ;;  %v560_v1 = vld [vmem:[#allocation8 + $0x8] sm:$0xff]  ;;  %vm556_vm4 = vcmask 261312  }
  0x34   : > { %s999_s9 = smov 64   ;;  %s1000_s10 = smov 56  }
  0x35   : > { %271 = vmatpush.msra.mxu0 %v250_v2  ;;  %s1001_s21 = smov 40   ;;  %s1002_s24 = smov 48   ;;  %v559_v2 = vld [vmem:[#allocation8] sm:$0xff] }
  0x36   : > { %s1003_s25 = smov 16   ;;  %s1004_s12 = smov 8  }
  0x37   : > { %272 = vmatpush.msra.mxu0 %v249_v3  ;;  %s1005_s27 = smov 24   ;;  %s723_s28 = sshll.u32 %s1055_s22, 3 }
  0x38   : > { %708 = vmatmul.msk.f32.vlgmr.msra.gmra.mxu0 %vm253_vm0, %v248_v4  ;;  %s592_s22 = scalar_lea.sflag [#allocation5], %s1131_s14 }
  0xb5   : > { %v274_v5 = vpop.f32.mrf.mxu0 }
  0xb6   : > { %489 = vrot.lane.b32.xlu2 %v274_v5, %s992_s23  ;;  %279 = vrot.lane.b32.xlu0 %v274_v5, %s993_s13  ;;  %v277_v6 = vmul.f32 0.35355338, %v274_v5 }
  0xb8   : > { %345 = vrot.lane.b32.xlu1 %v277_v6, %s994_s29  ;;  %s602_s29 = scalar_lea.hbm %s1211_s4, %s723_s28 }
  0xbe   : > { %347 = vrot.lane.b32.xlu0 %v274_v5, %s995_s30  ;;  %416 = vrot.lane.b32.xlu2 %v277_v6, %s996_s5 }
  0xc0   : > { %418 = vrot.lane.b32.xlu1 %v274_v5, %s997_s6  ;;  %s247_s6 = scalar_lea.vmem [#allocation9], %s704_s26  ;;  %s936_s26 = scalar_lea.hbm %s1211_s4, 16 }
  0xc6   : > { %487 = vrot.lane.b32.xlu0 %v277_v6, %s998_s7  ;;  %s604_s7 = sshll.u32 %s247_s6, 4  ;;  %s605_s7 = int_to_ptr.vmem [resolvable:$true] %s604_s7 }
  0xce   : > { %316 = vrot.lane.b32.xlu0 %v274_v5, %s999_s9  ;;  %s606_s9 = sshll.u32 %s602_s29, 4  ;;  %s607_s9 = int_to_ptr.hbm [resolvable:$true] %s606_s9 }
 0x110   : > { %v490_v7 = vpop.permute.xlu2 %489 }
 0x111   : > { %718 = vmatpush.xpose.msk.msrb.mxu0 %vm281_vm1, %v490_v7 }
 0x118   : > { %v417_v12 = vpop.permute.xlu2 %416 }
 0x128   : > { %v280_v8 = vpop.permute.xlu0 %279 }
 0x129   : > { %709 = vmatpush.xpose.msk.msra.mxu1 %vm281_vm1, %v280_v8 }
 0x12a   : > { %v346_v9 = vpop.permute.xlu1 %345 }
 0x12c   : > { %710 = vmatmul.msk.f32.vlgmr.msra.gmra.mxu1 %vm281_vm1, %v277_v6  ;;  %v809_v6 = vld [vmem:[%s1210_s3] ss:$0 sm:$0xff] }
 0x130   : > { %v348_v10 = vpop.permute.xlu0 %347 }
 0x131   : > { %712 = vmatpush.xpose.msk.msra.mxu3 %vm281_vm1, %v348_v10 }
 0x132   : > { %v419_v11 = vpop.permute.xlu1 %418 }
 0x133   : > { %715 = vmatpush.xpose.msk.msrb.mxu1 %vm281_vm1, %v419_v11 }
 0x134   : > { %713 = vmatmul.msk.f32.vlgmr.msra.gmra.mxu3 %vm281_vm1, %v346_v9 }
 0x136   : > { %716 = vmatmul.msk.f32.vlgmr.msrb.gmra.mxu1 %vm281_vm1, %v417_v12 }
 0x137   : > { %582 = vmatpush.msra.mxu1 %v562_v63 }
 0x138   : > { %v488_v13 = vpop.permute.xlu0 %487 }
 0x139   : > { %719 = vmatmul.msk.f32.vlgmr.msrb.gmra.mxu0 %vm281_vm1, %v488_v13  ;;  %583 = vmatpush.msra.mxu1 %v561_v0 }
 0x13b   : > { %584 = vmatpush.msra.mxu1 %v560_v1 }
 0x13d   : > { %585 = vmatpush.msra.mxu1 %v559_v2 }
 0x140   : > { %v317_v14 = vpop.permute.xlu0 %316 }
 0x141   : > { %337 = vmatpush.msra.mxu2 %v317_v14 }
 0x1a9   : > { %v304_v15 = vpop.f32.mrf.mxu1 }
 0x1aa   : > { %v307_v16 = vsel %vm281_vm1, %v304_v15, -inf }
 0x1ab   : > { %308 = vmax.xlane.f32.xlu1 %v307_v16 }
 0x1b3   : > { %v441_v17 = vpop.f32.mrf.mxu1 }
 0x1b4   : > { %v444_v18 = vsel %vm281_vm1, %v441_v17, -inf }
 0x1b5   : > { %445 = vmax.xlane.f32.xlu0 %v444_v18 }
 0x1b6   : > { %v512_v19 = vpop.f32.mrf.mxu0 }
 0x1b7   : > { %v515_v20 = vsel %vm281_vm1, %v512_v19, -inf  ;;  %v370_v21 = vpop.f32.mrf.mxu3 }
 0x1b8   : > { %516 = vmax.xlane.f32.xlu2 %v515_v20  ;;  %v373_v22 = vsel %vm281_vm1, %v370_v21, -inf }
 0x1c0   : > { %374 = vmax.xlane.f32.xlu2 %v373_v22 }
 0x1c4   : > { %382 = vrot.lane.b32.xlu1 %v274_v5, %s1000_s10  ;;  %s930_s10 = sshra.s32 %s607_s9, 4  ;;  %s931_s10 = int_to_ptr.hbm [resolvable:$true] %s930_s10 }
 0x1c5   : > { %p937_p12 = scmp.lt.s32.totalorder %s931_s10, %s1211_s4 }
 0x1c9   : > { %524 = vrot.lane.b32.xlu0 %v274_v5, %s1001_s21  ;;  %s932_s21 = scalar_lea.hbm %s931_s10, 8 }
 0x1ca   : > { %p933_p1 = scmp.ne.s32.totalorder %s931_s10, %s932_s21  ;;  %p938_p7 = scmp.lt.s32.totalorder %s936_s26, %s932_s21 }
 0x1cc   : > { %p934_p3 = pnand %p933_p1, %p1100_p4  ;;  %p939_p8 = por %p938_p7, %p937_p12 }
 0x1ce   : > { %p935_p5 = pneg %p934_p3 }
 0x1d0   : > { %p940_p9 = pnand %p939_p8, %p935_p5 }
 0x1d8   : > { %453 = vrot.lane.b32.xlu2 %v274_v5, %s1002_s24 }
 0x21e   : > { %v309_v23 = vpop.xlane.xlu1 %308 }
 0x21f   : > { %v310_v24 = vsub.f32 %v304_v15, %v309_v23 }
 0x221   : > { %v311_v25 = vmul.f32 1.442695, %v310_v24 }
 0x223   : > { %810 = vpow2.f32 %v311_v25 }
 0x228   : > { %v446_v26 = vpop.xlane.xlu0 %445 }
 0x229   : > { %v811_v27 = vpop.eup %810  ;;  %v447_v28 = vsub.f32 %v441_v17, %v446_v26 }
 0x22a   : > { %711 = vmatmul.msk.f32.vlgmr.msra.gmra.mxu2 %vm281_vm1, %v811_v27  ;;  %v313_v45 = vsel %vm281_vm1, %v811_v27, 0.0 }
 0x22b   : > { %v448_v29 = vmul.f32 1.442695, %v447_v28  ;;  %v517_v30 = vpop.xlane.xlu2 %516 }
 0x22c   : > { %v518_v31 = vsub.f32 %v512_v19, %v517_v30 }
 0x22d   : > { %812 = vpow2.f32 %v448_v29 }
 0x22e   : > { %v519_v32 = vmul.f32 1.442695, %v518_v31 }
 0x230   : > { %814 = vpow2.f32 %v519_v32 }
 0x233   : > { %v813_v33 = vpop.eup %812  ;;  %v375_v34 = vpop.xlane.xlu2 %374 }
 0x234   : > { %v376_v35 = vsub.f32 %v370_v21, %v375_v34  ;;  %v450_v36 = vsel %vm281_vm1, %v813_v33, 0.0 }
 0x235   : > { %451 = vadd.xlane.f32.xlu2 %v450_v36 }
 0x236   : > { %v815_v37 = vpop.eup %814  ;;  %v377_v38 = vmul.f32 1.442695, %v376_v35  ;;  %v383_v39 = vpop.permute.xlu1 %382 }
 0x237   : > { %403 = vmatpush.msrb.mxu2 %v383_v39  ;;  %v521_v40 = vsel %vm281_vm1, %v815_v37, 0.0 }
 0x238   : > { %816 = vpow2.f32 %v377_v38  ;;  %522 = vadd.xlane.f32.xlu0 %v521_v40 }
 0x23b   : > { %v454_v41 = vpop.permute.xlu2 %453  ;;  %v525_v42 = vpop.permute.xlu0 %524 }
 0x23c   : > { %474 = vmatpush.msrb.mxu3 %v454_v41  ;;  %545 = vmatpush.msra.mxu2 %v525_v42 }
 0x23d   : > { %717 = vmatmul.msk.f32.vlgmr.msrb.gmra.mxu3 %vm281_vm1, %v813_v33 }
 0x23e   : > { %v817_v43 = vpop.eup %816 }
 0x23f   : > { %714 = vmatmul.msk.f32.vlgmr.msrb.gmra.mxu2 %vm281_vm1, %v817_v43  ;;  %v379_v44 = vsel %vm281_vm1, %v817_v43, 0.0 }
 0x240   : > { %380 = vadd.xlane.f32.xlu1 %v379_v44 }
 0x247   : > { %720 = vmatmul.msk.f32.vlgmr.msra.gmra.mxu2 %vm281_vm1, %v815_v37 }
 0x248   : > { %314 = vadd.xlane.f32.xlu1 %v313_v45 }
 0x2a8   : > { %v452_v47 = vpop.xlane.xlu2 %451 }
 0x2a9   : > { %818 = vrcp.f32 %v452_v47 }
 0x2ab   : > { %v523_v53 = vpop.xlane.xlu0 %522 }
 0x2ad   : > { %v339_v48 = vpop.f32.mrf.mxu2 }
 0x2af   : > { %v819_v50 = vpop.eup %818 }
 0x2b3   : > { %v381_v46 = vpop.xlane.xlu1 %380 }
 0x2b4   : > { %820 = vrcp.f32 %v381_v46 }
 0x2ba   : > { %v821_v52 = vpop.eup %820 }
 0x2bb   : > { %v315_v49 = vpop.xlane.xlu1 %314 }
 0x2bc   : > { %822 = vrcp.f32 %v315_v49 }
 0x2bd   : > { %824 = vrcp.f32 %v523_v53 }
 0x2c0   : > { %v476_v51 = vpop.f32.mrf.mxu3 }
 0x2c1   : > { %v480_v54 = vmul.f32 %v819_v50, %v476_v51 }
 0x2c2   : > { %v823_v55 = vpop.eup %822  ;;  %v405_v56 = vpop.f32.mrf.mxu2 }
 0x2c3   : > { %v343_v57 = vmul.f32 %v823_v55, %v339_v48  ;;  %v409_v58 = vmul.f32 %v821_v52, %v405_v56  ;;  %482 = vrot.lane.b32.xlu1 %v480_v54, %s1003_s25  ;;  %v825_v59 = vpop.eup %824 }
 0x2c5   : > { %344 = vst.msk [vmem:[#allocation2] sm:$0xff] %vm281_vm1, %v343_v57  ;;  %411 = vrot.lane.b32.xlu2 %v409_v58, %s1004_s12 }
 0x2ca   : > { %v547_v60 = vpop.f32.mrf.mxu2 }
 0x2cb   : > { %v551_v61 = vmul.f32 %v825_v59, %v547_v60 }
 0x2cd   : > { %553 = vrot.lane.b32.xlu0 %v551_v61, %s1005_s27 }
 0x31f   : > { %v412_v62 = vpop.permute.xlu2 %411 }
 0x320   : > { %415 = vst.msk [vmem:[#allocation2] sm:$0xff] %vm414_vm2, %v412_v62 }
 0x335   : > { %v483_v3 = vpop.permute.xlu1 %482 }
 0x336   : > { %486 = vst.msk [vmem:[#allocation2] sm:$0xff] %vm485_vm3, %v483_v3 }
 0x33f   : > { %v554_v4 = vpop.permute.xlu0 %553 }
 0x340   : > { %557 = vst.msk [vmem:[#allocation2] sm:$0xff] %vm556_vm4, %v554_v4 }
 0x347   : > { %v558_v5 = vld [vmem:[#allocation2] sm:$0xff] }
 0x348   : > { %721 = vmatmul.msk.f32.vlgmr.msra.gmra.mxu1 %vm253_vm0, %v558_v5 }
 0x3c5   : > { %v587_v7 = vpop.f32.mrf.mxu1 }
 0x3c6   : > { %v588_v8 = vadd.f32 %v809_v6, %v587_v7 }
 0x3c8   : > { %590 = vst.msk [vmem:[%s247_s6] sm:$0xff] %vm253_vm0, %v588_v8 }
 0x3c9   : > { %943 = shalt.err (!%p940_p9)
}
 0x3ca   : > { %736 = dma.vmem_to_hbm [thread:$0]  (%p1100_p4), %s605_s7, 128, %s607_s9, %s592_s22  }
 0x3cb PF: > { %s618_s14 = sand.u32 1, %s974_s15   ;;  %p1218_p10 = scmp.ge.s32.totalorder %s986_s18, 2 }
 0x3cc   : > { %s619_s28 = scalar_lea.sflag [#allocation5], %s618_s14 }
 0x3cd   : > { %p750_p13 = pnand %p1218_p10, %p1104_p6 }
 0x3cf   : > { %p751_p11 = pneg %p750_p13 }
 0x3d1   : > { %969 = dma.done.wait (%p751_p11), %s619_s28, 128  }
 0x3d2   : > { %971 = vsyncadd (%p751_p11), %s619_s28, 4294967168  ;;  %p18_p0 = scmp.ge.s32.totalorder %s1074_s8, 4   ;;  %s1219_s15 = smov %s978_s16 }
 0x3d3   : > { %s1220_s16 = smov %s982_s17  ;;  %s1221_s17 = smov %s1085_s11 }
 0x3d4   : > { %s1222_s18 = smov %s1074_s8  ;;  %20 = sbr.rel (!%p18_p0) target bundleno = 6 (0x6), region = 89 }
 0x3d9   :  { %625 = vsyncpa [#allocation4], 1 }
 0x3da   :  { %627 = vsyncpa [#allocation4 + $0x1], 1 }
 0x3db   :  { %628 = vsyncpa [#allocation7], 1 }
 0x3dc   :  { %629 = vsyncpa [#allocation5], 1 }
 0x3dd   :  { %631 = vsyncpa [#allocation5 + $0x1], 1 }

</bundles_post_ra>
